<compile_context>
chip_gen: v7x
topology: tpu7x:2x2x1
jax: 0.10.0
libtpu: 0.0.40
codegen_flags: <defaults>
</compile_context>

<pallas_src>
import functools
import math

import jax
import jax.numpy as jnp
from jax import lax
from jax.experimental import pallas as pl
from jax.experimental.pallas import tpu as pltpu


_SQRT_HALF = math.sqrt(0.5)
_VMEM_BUDGET = 44 * 1024 * 1024      # working-set target (fits v7x's 64 MiB VMEM)
_VMEM_LIMIT = 56 * 1024 * 1024       # scoped limit handed to Mosaic (portable)


def _round_up(x: int, m: int) -> int:
    return ((x + m - 1) // m) * m


def _itemsize(dt) -> int:
    return jax.dtypes.canonicalize_dtype(dt).itemsize


def _gelu_exact(y):
    # exact (erf) GELU -- matches torch.nn.GELU() default
    return 0.5 * y * (1.0 + lax.erf(y * _SQRT_HALF))


# ------------------------------- kernels -------------------------------------

def _ffn_resident_kernel(x_ref, w_ref, b_ref, o_ref, *, activation):
    """o = act(x @ w + b) with the full weight resident in VMEM.

    x:[tm,K] (f32 in HBM, cast to w.dtype in-kernel)   w:[K,D] (bf16, resident)
    b:[1,D] (f32)                                       o:[tm,D] (bf16)
    """
    x = x_ref[...].astype(w_ref.dtype)
    y = jnp.dot(x, w_ref[...], preferred_element_type=jnp.float32)
    y = y + b_ref[...]                      # f32 epilogue
    if activation == "gelu":
        y = _gelu_exact(y)
    o_ref[...] = y.astype(o_ref.dtype)


def _ffn_ktiled_kernel(x_ref, w_ref, b_ref, o_ref, acc_ref, *, activation):
    """Fallback: tiled (i, j, k) matmul with a resident f32 accumulator.
    x is pre-cast to the weight dtype in the wrapper (it is re-read across j)."""
    k = pl.program_id(2)

    @pl.when(k == 0)
    def _():
        acc_ref[...] = jnp.zeros_like(acc_ref)

    acc_ref[...] += jnp.dot(x_ref[...], w_ref[...],
                            preferred_element_type=jnp.float32)

    @pl.when(k == pl.num_programs(2) - 1)
    def _():
        y = acc_ref[...] + b_ref[...]
        if activation == "gelu":
            y = _gelu_exact(y)
        o_ref[...] = y.astype(o_ref.dtype)


# --------------------------- tile-size selection ------------------------------

def _prefer_divisor(tm: int, n8: int, min_frac: int = 4) -> int:
    """Prefer a row-tile that divides the 8-padded row count (no dead rows),
    but never one more than `min_frac`x smaller than the requested tile."""
    if n8 % tm == 0:
        return tm
    for cand in range(tm - 8, 7, -8):
        if n8 % cand == 0 and cand * min_frac >= tm:
            return cand
    return tm


def _resident_vmem_bytes(tm, k_p, d_p, x_bytes, w_bytes, out_bytes):
    # Conservative: budget double buffers for everything (the weight is only
    # fetched once thanks to its constant index_map, but count its allocation
    # at 2x anyway).
    return (2 * tm * (k_p * x_bytes + d_p * out_bytes)
            + 2 * (k_p * d_p * w_bytes + d_p * 4))


def _pick_tm_resident(n, k_p, d_p, x_bytes, w_bytes, out_bytes, desired=512):
    n8 = _round_up(n, 8)
    tm = min(desired, n8)
    # keep >= 2 row tiles so the grid can shard across v7x's two TensorCores
    if n8 > 8 and tm >= n8:
        tm = _round_up(-(-n8 // 2), 8)
    # shrink until the double-buffered working set fits the VMEM budget
    while tm > 8 and _resident_vmem_bytes(tm, k_p, d_p, x_bytes, w_bytes,
                                          out_bytes) > _VMEM_BUDGET:
        tm = max(8, _round_up(tm // 2, 8))
    tm = _prefer_divisor(tm, n8)
    return tm, _round_up(n8, tm)


def _largest_divisor_tile(dim_p: int, desired: int) -> int:
    """Largest multiple of 128 that divides dim_p (itself a 128-multiple) and
    is <= desired.  Guarantees zero padded-K / padded-N MXU work."""
    best, t = 128, 128
    while t <= min(desired, dim_p):
        if dim_p % t == 0:
            best = t
        t += 128
    return best


# --------------------------- parameter preparation ----------------------------

def prepare_linear_params(weight, bias, *, weight_dtype=jnp.bfloat16):
    """One-time prep of a torch-layout nn.Linear (weight [out, in], bias [out])
    into kernel-ready layout: transposed to [in, out], padded to 128-multiples,
    persistently cast (bf16 by default).  Done at init, NOT per forward call."""
    dout, din = weight.shape
    k_p = _round_up(din, 128)
    d_p = _round_up(dout, 128)
    w_kd = weight.T
    if (k_p, d_p) != (din, dout):
        w_kd = jnp.pad(w_kd, ((0, k_p - din), (0, d_p - dout)))
    w_kd = w_kd.astype(weight_dtype)
    b_p = bias.astype(jnp.float32)
    if d_p != dout:
        b_p = jnp.pad(b_p, (0, d_p - dout))
    return {"w": w_kd, "b": b_p.reshape(1, d_p), "din": din, "dout": dout}


# ------------------------------- linear + act ---------------------------------

def linear_act(x, prep, *, activation="gelu", out_dtype=jnp.bfloat16,
               force_ktiled=False):
    """act(x @ W^T + b) with W/b pre-prepared by prepare_linear_params.
    x: [N, din] (f32 or bf16) -> [N, dout] in out_dtype."""
    n, din = x.shape
    assert din == prep["din"], (din, prep["din"])
    w, b = prep["w"], prep["b"]
    k_p, d_p = w.shape
    dout = prep["dout"]

    x_bytes = x.dtype.itemsize
    w_bytes = w.dtype.itemsize
    out_bytes = _itemsize(out_dtype)

    resident_fits = (_resident_vmem_bytes(8, k_p, d_p, x_bytes, w_bytes,
                                          out_bytes) <= _VMEM_BUDGET)

    if resident_fits and not force_ktiled:
        # ---- primary path: resident weight, single "parallel" token axis ----
        tm, n_p = _pick_tm_resident(n, k_p, d_p, x_bytes, w_bytes, out_bytes)
        x_p = x
        if (n_p, k_p) != (n, din):
            x_p = jnp.pad(x, ((0, n_p - n), (0, k_p - din)))
        out = pl.pallas_call(
            functools.partial(_ffn_resident_kernel, activation=activation),
            out_shape=jax.ShapeDtypeStruct((n_p, d_p), out_dtype),
            grid_spec=pltpu.PrefetchScalarGridSpec(
                num_scalar_prefetch=0,
                grid=(n_p // tm,),
                in_specs=[pl.BlockSpec((tm, k_p), lambda i: (i, 0)),
                          pl.BlockSpec((k_p, d_p), lambda i: (0, 0)),
                          pl.BlockSpec((1, d_p), lambda i: (0, 0))],
                out_specs=pl.BlockSpec((tm, d_p), lambda i: (i, 0))),
            compiler_params=pltpu.CompilerParams(
                dimension_semantics=("parallel",),
                vmem_limit_bytes=_VMEM_LIMIT),
        )(x_p, w, b)
    else:
        # ---- fallback: weight too large to keep resident -> 3-D tiled matmul.
        # tk / tn divide the 128-padded dims (no padded-K MXU/DMA waste);
        # x is cast to the weight dtype up front since it is re-read d_p // tn
        # times across the j axis.
        tk = _largest_divisor_tile(k_p, 512)
        tn = _largest_divisor_tile(d_p, 512)
        n8 = _round_up(n, 8)
        tm = _prefer_divisor(min(256, n8), n8)
        n_p = _round_up(n8, tm)
        x_p = x.astype(w.dtype)
        if (n_p, k_p) != (n, din):
            x_p = jnp.pad(x_p, ((0, n_p - n), (0, k_p - din)))
        out = pl.pallas_call(
            functools.partial(_ffn_ktiled_kernel, activation=activation),
            out_shape=jax.ShapeDtypeStruct((n_p, d_p), out_dtype),
            grid_spec=pltpu.PrefetchScalarGridSpec(
                num_scalar_prefetch=0,
                grid=(n_p // tm, d_p // tn, k_p // tk),
                in_specs=[pl.BlockSpec((tm, tk), lambda i, j, k: (i, k)),
                          pl.BlockSpec((tk, tn), lambda i, j, k: (k, j)),
                          pl.BlockSpec((1, tn), lambda i, j, k: (0, j))],
                out_specs=pl.BlockSpec((tm, tn), lambda i, j, k: (i, j)),
                scratch_shapes=[pltpu.VMEM((tm, tn), jnp.float32)]),
            compiler_params=pltpu.CompilerParams(
                dimension_semantics=("parallel", "parallel", "arbitrary"),
                vmem_limit_bytes=_VMEM_LIMIT),
        )(x_p, w, b)

    if (n_p, d_p) != (n, dout):
        out = out[:n, :dout]
    return out


# -------------------------- BertIntermediate module ---------------------------

def init_bert_intermediate_params(key, hidden_size, intermediate_size):
    """torch nn.Linear-style init: weight [I, H], bias [I] (f32)."""
    wk, bk = jax.random.split(key)
    bound = 1.0 / math.sqrt(hidden_size)
    weight = jax.random.uniform(wk, (intermediate_size, hidden_size),
                                jnp.float32, -bound, bound)
    bias = jax.random.uniform(bk, (intermediate_size,), jnp.float32,
                              -bound, bound)
    return {"dense_w": weight, "dense_b": bias}


def prepare_bert_intermediate(params, *, weight_dtype=jnp.bfloat16):
    """One-time conversion of torch-layout params to kernel-ready layout."""
    return prepare_linear_params(params["dense_w"], params["dense_b"],
                                 weight_dtype=weight_dtype)


def bert_intermediate(prepared, hidden_states, *, out_dtype=jnp.bfloat16,
                      force_ktiled=False):
    """GELU(hidden_states @ W.T + b) -- forward of BertIntermediate."""
    lead = hidden_states.shape[:-1]
    h = hidden_states.shape[-1]
    x2 = hidden_states.reshape(-1, h)
    y = linear_act(x2, prepared, activation="gelu", out_dtype=out_dtype,
                   force_ktiled=force_ktiled)
    return y.reshape(*lead, y.shape[-1])


def bert_intermediate_ref(params, hidden_states):
    """Pure-JAX f32 reference (exact erf GELU, like torch.nn.GELU())."""
    y = hidden_states @ params["dense_w"].T + params["dense_b"]
    return 0.5 * y * (1.0 + lax.erf(y * jnp.float32(_SQRT_HALF)))


# ----------------------------------- main -------------------------------------

if __name__ == "__main__":
    key = jax.random.PRNGKey(0)
    pkey, dkey = jax.random.split(key)

    B, S, H, I = 2, 8, 32, 64            # toy shapes consistent with the module
    params = init_bert_intermediate_params(pkey, H, I)
    prepared = prepare_bert_intermediate(params)   # one-time weight prep
    hidden_states = jax.random.normal(dkey, (B, S, H), jnp.float32)

    ref = bert_intermediate_ref(params, hidden_states)

    # Primary path: VMEM-resident weight, single token-axis grid.
    out = bert_intermediate(prepared, hidden_states)
    out = jax.block_until_ready(out)
    assert out.shape == (B, S, I), out.shape
    err = float(jnp.max(jnp.abs(out.astype(jnp.float32) - ref)))
    # bf16 MXU inputs + bf16 output, f32 accumulation/epilogue
    assert err < 5e-2, err

    # Fallback path (used when the weight cannot be VMEM-resident); exercise it
    # too so both code paths are verified on hardware.
    out_kt = bert_intermediate(prepared, hidden_states, force_ktiled=True)
    out_kt = jax.block_until_ready(out_kt)
    err_kt = float(jnp.max(jnp.abs(out_kt.astype(jnp.float32) - ref)))
    assert err_kt < 5e-2, err_kt

    print("KERNEL_OK")
</pallas_src>

<mosaic_0001>
module attributes {stable_mosaic.version = 11 : i64} {
  func.func @_ffn_resident_kernel(%arg0: i32, %arg1: memref<8x128xf32, #tpu.memory_space<vmem>>, %arg2: memref<128x128xbf16, #tpu.memory_space<vmem>>, %arg3: memref<1x128xf32, #tpu.memory_space<vmem>>, %arg4: memref<8x128xbf16, #tpu.memory_space<vmem>>) attributes {dimension_semantics = [#tpu.dimension_semantics<parallel>], iteration_bounds = array<i64: 2>, scalar_prefetch = 0 : i64, scratch_operands = 0 : i64, tpu.core_type = #tpu.core_type<tc>, window_params = [{transform_indices = @transform_0, window_bounds = array<i64: 8, 128>}, {pipeline_mode = #tpu.pipeline_mode<synchronous>, transform_indices = @transform_1, window_bounds = array<i64: 128, 128>}, {pipeline_mode = #tpu.pipeline_mode<synchronous>, transform_indices = @transform_2, window_bounds = array<i64: 1, 128>}, {transform_indices = @transform_3, window_bounds = array<i64: 8, 128>}]} {
    %c0 = arith.constant 0 : index
    %c0_0 = arith.constant 0 : index
    %0 = vector.load %arg1[%c0, %c0_0] : memref<8x128xf32, #tpu.memory_space<vmem>>, vector<8x128xf32>
    %1 = arith.truncf %0 : vector<8x128xf32> to vector<8x128xbf16>
    %c0_1 = arith.constant 0 : index
    %c0_2 = arith.constant 0 : index
    %2 = vector.load %arg2[%c0_1, %c0_2] : memref<128x128xbf16, #tpu.memory_space<vmem>>, vector<128x128xbf16>
    %cst = arith.constant dense<0.000000e+00> : vector<8x128xf32>
    %3 = tpu.matmul %1, %2, %cst {dimension_numbers = #tpu.dot_dimension_numbers<[1], [0], [0], [1], [0, 0, 1, 1], [], []>} : vector<8x128xbf16>, vector<128x128xbf16>, vector<8x128xf32> -> vector<8x128xf32>
    %c0_3 = arith.constant 0 : index
    %c0_4 = arith.constant 0 : index
    %4 = vector.load %arg3[%c0_3, %c0_4] : memref<1x128xf32, #tpu.memory_space<vmem>>, vector<1x128xf32>
    %5 = vector.broadcast %4 : vector<1x128xf32> to vector<8x128xf32>
    %6 = arith.addf %3, %5 : vector<8x128xf32>
    %cst_5 = arith.constant 5.000000e-01 : f32
    %7 = vector.broadcast %cst_5 : f32 to vector<8x128xf32>
    %8 = arith.mulf %7, %6 : vector<8x128xf32>
    %cst_6 = arith.constant 0.707106769 : f32
    %9 = vector.broadcast %cst_6 : f32 to vector<8x128xf32>
    %10 = arith.mulf %6, %9 : vector<8x128xf32>
    %11 = math.erf %10 : vector<8x128xf32>
    %cst_7 = arith.constant 1.000000e+00 : f32
    %12 = vector.broadcast %cst_7 : f32 to vector<8x128xf32>
    %13 = arith.addf %12, %11 : vector<8x128xf32>
    %14 = arith.mulf %8, %13 : vector<8x128xf32>
    %15 = arith.truncf %14 : vector<8x128xf32> to vector<8x128xbf16>
    %c0_8 = arith.constant 0 : index
    %c0_9 = arith.constant 0 : index
    %16 = vector.load %arg4[%c0_8, %c0_9] : memref<8x128xbf16, #tpu.memory_space<vmem>>, vector<8x128xbf16>
    tpu.vector_store %arg4[%c0_8, %c0_9], %15 {strides = array<i32>} : memref<8x128xbf16, #tpu.memory_space<vmem>>, vector<8x128xbf16>,
    return
  }
  func.func @transform_0(%arg0: i32) -> (i32, i32) {
    %c0_i32 = arith.constant 0 : i32
    %c0_i32_0 = arith.constant 0 : i32
    return %arg0, %c0_i32 : i32, i32
  }
  func.func @transform_1(%arg0: i32) -> (i32, i32) {
    %c0_i32 = arith.constant 0 : i32
    %c0_i32_0 = arith.constant 0 : i32
    %c0_i32_1 = arith.constant 0 : i32
    return %c0_i32, %c0_i32_0 : i32, i32
  }
  func.func @transform_2(%arg0: i32) -> (i32, i32) {
    %c0_i32 = arith.constant 0 : i32
    %c0_i32_0 = arith.constant 0 : i32
    %c0_i32_1 = arith.constant 0 : i32
    return %c0_i32, %c0_i32_0 : i32, i32
  }
  func.func @transform_3(%arg0: i32) -> (i32, i32) {
    %c0_i32 = arith.constant 0 : i32
    %c0_i32_0 = arith.constant 0 : i32
    return %arg0, %c0_i32 : i32, i32
  }
}

</mosaic_0001>

<bundles_post_ra>
// kernel: tpu_custom_call.1
= control target key start
LH: loop header
LB: loop body
LE: loop exit
PB: predicated region body
PF: predicated region fallthrough
CT: control target
= control target key end

     0   :  { %8 = vsyncpa [#allocation3], 0  ;;  %s896_s0 = inlined_call_operand.hbm [shape: f32[16,128], index: 0, kind: input, shape index: {}]   ;;  %s897_s1 = inlined_call_operand.hbm [shape: bf16[128,128], index: 1, kind: input, shape index: {}]   ;;  %s898_s2 = inlined_call_operand.vmem [shape: f32[1,128], index: 2, kind: input, shape index: {}]   ;;  %s899_s3 = inlined_call_operand.hbm [shape: bf16[16,128], index: 3, kind: output, shape index: {}]  }
   0x1   :  { %10 = vsyncpa [#allocation3 + $0x1], 0 }
   0x2   :  { %11 = vsyncpa [#allocation6], 0 }
   0x3   :  { %12 = vsyncpa [#allocation4], 0 }
   0x4   :  { %14 = vsyncpa [#allocation4 + $0x1], 0  ;;  %s696_s12 = smov 0   ;;  %s698_s13 = smov 0  }
   0x5   :  { %s700_s14 = smov 0   ;;  %s702_s15 = smov 0  }
   0x6 LB: > { %s717_s16 = sadd.s32 4294967295, %s667_s15   ;;  %s416_s17 = sadd.s32 4294967294, %s667_s15   ;;  %s667_s15 = sphi %s702_s15, %s919_s15   ;;  %s663_s14 = sphi %s700_s14, %s918_s14   ;;  %s659_s13 = sphi %s698_s13, %s917_s13   ;;  %s655_s12 = sphi %s696_s12, %s916_s12  }
   0x7   : > { %p40_p0 = scmp.ne.s32.totalorder %s659_s13, %s655_s12  ;;  %p900_p1 = scmp.eq.s32.totalorder %s717_s16, 0 }
   0x8   : > { %p112_p3 = scmp.eq.s32.totalorder %s416_s17, 1  ;;  %p417_p5 = scmp.ge.s32.totalorder %s667_s15, 1 }
   0x9   : > { %p726_p4 = por %p900_p1, %p40_p0  ;;  %p119_p7 = scmp.lt.s32.totalorder %s667_s15, 3 }
   0xa   : > { %p731_p6 = por %p112_p3, %p40_p0  ;;  %s669_s21 = smov [#allocation5]  }
   0xb   : > { %s903_s18 = scalar_select %p726_p4, 1, 0 }
   0xc   : > { %s904_s19 = scalar_select %p731_p6, 1, 0 }
   0xd   : > { %p736_p8 = pnand %p417_p5, %p119_p7  ;;  %s131_s22 = sshll.u32 %s669_s21, 4  ;;  %s740_s22 = int_to_ptr.vmem [resolvable:$true] %s131_s22 }
   0xe   : > { %s752_s24 = sadd.s32 1, %s667_s15   ;;  %s27_s25 = sadd.s32 1, %s663_s14 }
   0xf   : > { %s905_s20 = scalar_select %p736_p8, 1, 0 }
  0x10   : > { %p476_p9 = pneg %p736_p8  ;;  %s24_s26 = ssub.s32 %s667_s15, %s752_s24 }
  0x11   : > { %s539_s29 = scalar_lea.hbm %s897_s1, 1024 }
  0x12   : > { %p747_p11 = pnand %p476_p9, %p900_p1  ;;  %p540_p12 = scmp.ne.s32.totalorder %s897_s1, %s539_s29 }
  0x13   : > { %p546_p5 = scmp.lt.u32.totalorder %s539_s29, %s897_s1 }
  0x14   : > { %p541_p13 = pneg %p747_p11 }
  0x16   : > { %p542_p0 = pnand %p541_p13, %p540_p12 }
  0x18   : > { %p543_p3 = pneg %p542_p0 }
  0x1a   : > { %p548_p7 = pnand %p546_p5, %p543_p3 }
  0x1c   : > { %551 = shalt.err (!%p548_p7)
}
  0x1d   : > { %s552_s7 = scalar_lea.vmem %s740_s22, 1024  ;;  %p560_p2 = scmp.lt.s32.totalorder %s740_s22, %s740_s22 }
  0x1e   : > { %p553_p9 = scmp.ne.s32.totalorder %s740_s22, %s552_s7  ;;  %p561_p6 = scmp.lt.s32.totalorder %s552_s7, %s552_s7 }
  0x20   : > { %p555_p10 = pnand %p553_p9, %p541_p13  ;;  %p562_p4 = por %p561_p6, %p560_p2 }
  0x22   : > { %p556_p1 = pneg %p555_p10 }
  0x24   : > { %p563_p8 = pnand %p562_p4, %p556_p1 }
  0x26   : > { %566 = shalt.err (!%p563_p8)
}
  0x27   : > { %s670_s8 = smov 64   ;;  %s671_s9 = smov 4  }
  0x28   : > { %479 = dma.hbm_to_vmem [thread:$0]  (!%p747_p11), %s897_s1, 1024, %s740_s22, [#allocation6], %s670_s8, %s670_s8, %s671_s9  }
  0x29   : > { %p25_p2 = scmp.eq.s32.totalorder %s24_s26, 0  ;;  %p34_p1 = scmp.ne.s32.totalorder %s663_s14, %s659_s13 }
  0x2a   : > { %p35_p4 = scmp.eq.s32.totalorder %s667_s15, 0  ;;  %p489_p6 = scmp.lt.s32.totalorder %s667_s15, 2 }
  0x2b   : > { %s783_s17 = scalar_select %p25_p2, %s663_s14, %s27_s25  }
  0x2c   : > { %p36_p8 = por %p35_p4, %p34_p1  ;;  %p907_p10 = scmp.eq.s32.totalorder %s717_s16, 1 }
  0x2d   : > { %s148_s27 = sand.u32 1, %s663_s14   ;;  %s421_s28 = sshll.u32 %s667_s15, 7 }
  0x2e   : > { %p787_p12 = por %p907_p10, %p34_p1  ;;  %s420_s29 = sshll.u32 %s148_s27, 3 }
  0x2f   : > { %s796_s4 = scalar_lea.hbm %s896_s0, %s421_s28  ;;  %s152_s22 = scalar_lea.vmem [#allocation2], %s420_s29 }
  0x30   : > { %s159_s25 = sshll.u32 %s152_s22, 4  ;;  %p798_p11 = pnand %p489_p6, %p36_p8  ;;  %s802_s25 = int_to_ptr.vmem [resolvable:$true] %s159_s25 }
  0x31   : > { %s149_s5 = scalar_lea.sflag [#allocation3], %s148_s27  ;;  %s567_s6 = scalar_lea.hbm %s796_s4, 128 }
  0x32   : > { %p568_p13 = scmp.ne.s32.totalorder %s796_s4, %s567_s6  ;;  %p569_p0 = pneg %p798_p11 }
  0x33   : > { %s572_s9 = scalar_lea.hbm %s896_s0, 256  ;;  %p573_p7 = scmp.lt.u32.totalorder %s796_s4, %s896_s0 }
  0x34   : > { %p570_p3 = pnand %p569_p0, %p568_p13  ;;  %p574_p9 = scmp.lt.u32.totalorder %s572_s9, %s567_s6 }
  0x35   : > { %p576_p1 = scmp.lt.u32.totalorder %s567_s6, %s796_s4 }
  0x36   : > { %p571_p5 = pneg %p570_p3  ;;  %p575_p2 = por %p574_p9, %p573_p7 }
  0x38   : > { %p577_p4 = por %p576_p1, %p575_p2 }
  0x3a   : > { %p578_p6 = pnand %p577_p4, %p571_p5 }
  0x3c   : > { %581 = shalt.err (!%p578_p6)
}
  0x3d   : > { %s582_s27 = scalar_lea.vmem %s802_s25, 128  ;;  %s672_s28 = smov [#allocation2]  }
  0x3e   : > { %p583_p8 = scmp.ne.s32.totalorder %s802_s25, %s582_s27  ;;  %s587_s29 = sshll.u32 %s672_s28, 4  ;;  %s588_s29 = int_to_ptr.vmem [resolvable:$false] %s587_s29 }
  0x3f   : > { %s589_s23 = scalar_lea.vmem %s588_s29, 256  ;;  %p590_p3 = scmp.lt.s32.totalorder %s802_s25, %s588_s29 }
  0x40   : > { %p585_p10 = pnand %p583_p8, %p569_p0  ;;  %p591_p7 = scmp.lt.s32.totalorder %s589_s23, %s582_s27 }
  0x42   : > { %p586_p13 = pneg %p585_p10  ;;  %p592_p9 = por %p591_p7, %p590_p3 }
  0x44   : > { %p593_p2 = pnand %p592_p9, %p586_p13 }
  0x46   : > { %596 = shalt.err (!%p593_p2)
}
  0x47   : > { %483 = dma.hbm_to_vmem [thread:$0]  (!%p798_p11), %s796_s4, 128, %s802_s25, %s149_s5  }
  0x48   : > { %p910_p5 = scmp.ne.s32.totalorder %s905_s20, 0 }
  0x49   : > { %s832_s30 = sand.u32 (!%p910_p5), 1, %s659_s13   ;;  %p911_p0 = scmp.ne.s32.totalorder (!%p910_p5), %s903_s18, 0 }
  0x4a   : > { %168 = sbr.rel (%p910_p5) target bundleno = 365 (0x16d), region = 32  ;;  %s423_s22 = sshll.u32 (!%p910_p5), %s832_s30, 3 }
  0x4b   : > { %s171_s6 = scalar_lea.sflag (!%p910_p5), [#allocation3], %s832_s30  ;;  %s174_s7 = scalar_lea.vmem (!%p910_p5), [#allocation2], %s423_s22 }
  0x51   : > { %642 = dma.done.wait (%p911_p0), %s171_s6, 128  }
  0x52   : > { %644 = vsyncadd (%p911_p0), %s171_s6, 4294967168  ;;  %p912_p1 = scmp.eq.s32.totalorder %s717_s16, 0 }
  0x54   : > { %646 = dma.done.wait (%p912_p1), [#allocation6], 1024   ;;  %p913_p11 = pmov %p912_p1 }
  0x55   : > { %v673_v0 = vmov 0.0   ;;  %vm674_vm0 = vmmov 0   ;;  %v529_v1 = vld [vmem:[#allocation5] sm:$0xff]   ;;  %v530_v2 = vld [vmem:[#allocation5 + $0x8] sm:$0xff]   ;;  %v531_v3 = vld [vmem:[#allocation5 + $0x10] sm:$0xff]   ;;  %s425_s4 = sshll.u32 %s832_s30, 2 }
  0x56   : > { %648 = vsyncadd (%p913_p11), [#allocation6], 4294966272  ;;  %448 = vmatprep.subr.bf16.mxu0 %v673_v0  ;;  %464 = vmatprep.mubr.msk.bf16.mxu0 %vm674_vm0, %v673_v0  ;;  %v532_v4 = vld [vmem:[#allocation5 + $0x18] sm:$0xff]   ;;  %v533_v5 = vld [vmem:[#allocation5 + $0x20] sm:$0xff]   ;;  %s436_s25 = sshll.u32 %s717_s16, 6  ;;  %s200_s26 = scalar_lea.vmem [#allocation7], %s425_s4 }
  0x57   : > { %449 = vmatpush3.bf16.msra.mxu0 %v529_v1  ;;  %v534_v6 = vld [vmem:[#allocation5 + $0x28] sm:$0xff]   ;;  %v535_v7 = vld [vmem:[#allocation5 + $0x30] sm:$0xff]   ;;  %v536_v8 = vld [vmem:[#allocation5 + $0x38] sm:$0xff]   ;;  %s336_s5 = sshll.u32 %s200_s26, 4  ;;  %s852_s10 = scalar_lea.hbm %s899_s3, %s436_s25  ;;  %s854_s5 = int_to_ptr.vmem [resolvable:$true] %s336_s5 }
  0x58   : > { %450 = vmatprep.subr.bf16.mxu0 %v673_v0  ;;  %v202_v9 = vld [vmem:[%s174_s7] sm:$0xff]  ;;  %s323_s11 = scalar_lea.sflag [#allocation4], %s832_s30  ;;  %s597_s27 = scalar_lea.vmem %s854_s5, 64 }
  0x59   : > { %v203_v10 = vpack.c.bf16 %v202_v9, %v202_v9  ;;  %v426_v11 = vld [vmem:[%s898_s2] ss:$0 sm:$0xff]  ;;  %p598_p4 = scmp.ne.s32.totalorder %s854_s5, %s597_s27  ;;  %s675_s16 = smov [#allocation7]  }
  0x5a   : > { %s601_s28 = sshll.u32 %s675_s16, 4  ;;  %s602_s28 = int_to_ptr.vmem [resolvable:$false] %s601_s28 }
  0x5b   : > { %451 = vmatpush3.bf16.msra.mxu0 %v530_v2  ;;  %p599_p6 = pnand %p598_p4, %p787_p12  ;;  %s603_s29 = scalar_lea.vmem %s602_s28, 128 }
  0x5c   : > { %452 = vmatprep.subr.bf16.mxu0 %v673_v0  ;;  %p604_p10 = scmp.lt.s32.totalorder %s854_s5, %s602_s28  ;;  %p605_p13 = scmp.lt.s32.totalorder %s603_s29, %s597_s27 }
  0x5d   : > { %p600_p8 = pneg %p599_p6 }
  0x5e   : > { %p606_p3 = por %p605_p13, %p604_p10 }
  0x5f   : > { %453 = vmatpush3.bf16.msra.mxu0 %v531_v3 }
  0x60   : > { %454 = vmatprep.subr.bf16.mxu0 %v673_v0  ;;  %p607_p7 = pnand %p606_p3, %p600_p8 }
  0x63   : > { %455 = vmatpush3.bf16.msra.mxu0 %v532_v4 }
  0x64   : > { %456 = vmatprep.subr.bf16.mxu0 %v673_v0 }
  0x67   : > { %457 = vmatpush3.bf16.msra.mxu0 %v533_v5 }
  0x68   : > { %458 = vmatprep.subr.bf16.mxu0 %v673_v0 }
  0x6b   : > { %459 = vmatpush3.bf16.msra.mxu0 %v534_v6 }
  0x6c   : > { %460 = vmatprep.subr.bf16.mxu0 %v673_v0 }
  0x6f   : > { %461 = vmatpush3.bf16.msra.mxu0 %v535_v7 }
  0x70   : > { %462 = vmatprep.subr.bf16.mxu0 %v673_v0 }
  0x73   : > { %463 = vmatpush3.bf16.msra.mxu0 %v536_v8 }
  0x76   : > { %465 = vmatmul.mubr.bf16.vlgmr.msra.gmra.mrb[0].mxu0 %v203_v10 }
 0x149   : > { %v309_v12 = vpop.f32.mrb[0].mxu0 }
 0x14a   : > { %v310_v13 = vadd.f32 %v426_v11, %v309_v12  ;;  %v466_v14 = vpop.f32.mrb[1].mxu0 }
 0x14b   : > { %v312_v15 = vpop.f32.mrb[2].mxu0 }
 0x14c   : > { %v316_v16 = vmul.f32 0.70710677, %v310_v13  ;;  %v467_v17 = vpop.f32.mrb[3].mxu0  ;;  %v315_v19 = vmul.f32 0.5, %v310_v13 }
 0x14e   : > { %537 = verf.f32 %v316_v16 }
 0x158   : > { %v538_v18 = vpop.eup %537 }
 0x159   : > { %v318_v20 = vadd.f32 1.0, %v538_v18 }
 0x15b   : > { %v319_v21 = vmul.f32 %v318_v20, %v315_v19 }
 0x15d   : > { %v320_v22 = vpack.c.bf16 %v319_v21, %v319_v21 }
 0x15f   : > { %321 = vst [vmem:[%s200_s26] sm:$0xf] %v320_v22 }
 0x160   : > { %610 = shalt.err (!%p607_p7)
}
 0x161   : > { %s611_s23 = scalar_lea.hbm %s852_s10, 64  ;;  %s615_s6 = scalar_lea.hbm %s899_s3, 128 }
 0x162   : > { %p612_p9 = scmp.ne.s32.totalorder %s852_s10, %s611_s23  ;;  %p616_p0 = scmp.lt.u32.totalorder %s852_s10, %s899_s3 }
 0x163   : > { %p617_p1 = scmp.lt.u32.totalorder %s615_s6, %s611_s23  ;;  %p619_p4 = scmp.lt.u32.totalorder %s611_s23, %s852_s10 }
 0x164   : > { %p613_p2 = pnand %p612_p9, %p787_p12 }
 0x165   : > { %p618_p11 = por %p617_p1, %p616_p0 }
 0x166   : > { %p614_p5 = pneg %p613_p2 }
 0x167   : > { %p620_p6 = por %p619_p4, %p618_p11 }
 0x169   : > { %p621_p8 = pnand %p620_p6, %p614_p5 }
 0x16b   : > { %624 = shalt.err (!%p621_p8)
}
 0x16c   : > { %474 = dma.vmem_to_hbm [thread:$0]  (%p787_p12), %s854_s5, 64, %s852_s10, %s323_s11  }
 0x16d PF: > { %s348_s20 = sand.u32 1, %s655_s12   ;;  %p914_p10 = scmp.ne.s32.totalorder %s904_s19, 0 }
 0x16e   : > { %p915_p13 = scmp.ge.s32.totalorder %s667_s15, 2  ;;  %s349_s4 = scalar_lea.sflag [#allocation4], %s348_s20 }
 0x170   : > { %p485_p3 = pnand %p915_p13, %p914_p10 }
 0x172   : > { %650 = dma.done.wait (!%p485_p3), %s349_s4, 64  }
 0x173   : > { %652 = vsyncadd (!%p485_p3), %s349_s4, 4294967232  ;;  %p17_p7 = scmp.ge.s32.totalorder %s752_s24, 4   ;;  %s916_s12 = smov %s659_s13 }
 0x174   : > { %s917_s13 = smov %s663_s14  ;;  %s918_s14 = smov %s783_s17 }
 0x175   : > { %s919_s15 = smov %s752_s24  ;;  %19 = sbr.rel (!%p17_p7) target bundleno = 6 (0x6), region = 81 }
 0x17c   :  { %354 = vsyncpa [#allocation3], 1 }
 0x17d   :  { %356 = vsyncpa [#allocation3 + $0x1], 1 }
 0x17e   :  { %357 = vsyncpa [#allocation6], 1 }
 0x17f   :  { %358 = vsyncpa [#allocation4], 1 }
 0x180   :  { %360 = vsyncpa [#allocation4 + $0x1], 1 }

</bundles_post_ra>
